<compile_context>
chip_gen: v6e
topology: v6e:2x2x1
jax: 0.10.0
libtpu: 0.0.40
codegen_flags: <defaults>
</compile_context>

<pallas_src>
import functools

import jax
import jax.numpy as jnp
from jax.experimental import pallas as pl
from jax.experimental.pallas import tpu as pltpu


def _round_up(n, m):
    return (n + m - 1) // m * m


def _center_loss_kernel(labels_ref, x_ref, centers_hbm, out_ref,
                        gbuf, gsem, *, batch, block_b):
    """One batch tile: gather centers[labels], accumulate clamped sq-distances."""
    i = pl.program_id(0)

    @pl.when(i == 0)
    def _init():
        out_ref[...] = jnp.zeros_like(out_ref)

    base = i * block_b

    # Gather centers[labels[base + r]] for every row of this tile.  All row
    # DMAs are issued back-to-back (run concurrently), then waited on.
    for r in range(block_b):
        idx = labels_ref[base + r]
        pltpu.make_async_copy(
            centers_hbm.at[pl.ds(idx, 1), :],
            gbuf.at[pl.ds(r, 1), :],
            gsem.at[r],
        ).start()
    for r in range(block_b):
        pltpu.make_async_copy(
            centers_hbm.at[pl.ds(0, 1), :],   # same shape/size as started copy
            gbuf.at[pl.ds(r, 1), :],
            gsem.at[r],
        ).wait()

    x = x_ref[...].astype(jnp.float32)            # (block_b, D)
    c = gbuf[...].astype(jnp.float32)             # (block_b, D)
    d = x - c
    sq = jnp.sum(d * d, axis=1, keepdims=True)    # (block_b, 1)
    sq = jnp.clip(sq, 1e-12, 1e12)

    # Mask rows that are pure batch padding.
    row = base + jax.lax.broadcasted_iota(jnp.int32, (block_b, 1), 0)
    masked = jnp.where(row < batch, sq, jnp.zeros_like(sq))

    partial = jnp.sum(masked, keepdims=True)      # (1, 1)
    out_ref[...] += partial * jnp.float32(1.0 / batch)


def center_loss(x, labels, centers, *, block_b=128):
    """x: (B, D) float, labels: (B,) int, centers: (C, D) float -> scalar f32."""
    B, D = x.shape

    # Batch tile: multiple of 8 (sublane granularity), capped at block_b.
    TB = _round_up(min(block_b, _round_up(B, 8)), 8)
    Bp = _round_up(B, TB)

    labels_i32 = labels.astype(jnp.int32)
    if Bp != B:
        x = jnp.pad(x, ((0, Bp - B), (0, 0)))
        labels_i32 = jnp.pad(labels_i32, (0, Bp - B))   # padded rows masked in-kernel

    kernel = functools.partial(_center_loss_kernel, batch=B, block_b=TB)

    out = pl.pallas_call(
        kernel,
        out_shape=jax.ShapeDtypeStruct((1, 1), jnp.float32),
        grid_spec=pltpu.PrefetchScalarGridSpec(
            num_scalar_prefetch=1,                                 # labels -> SMEM
            grid=(Bp // TB,),
            in_specs=[
                pl.BlockSpec((TB, D), lambda i, labels: (i, 0)),   # x tile (pipelined)
                pl.BlockSpec(memory_space=pl.ANY),                 # centers stay in HBM
            ],
            out_specs=pl.BlockSpec((1, 1), lambda i, labels: (0, 0)),
            scratch_shapes=[
                pltpu.VMEM((TB, D), centers.dtype),                # gathered center rows
                pltpu.SemaphoreType.DMA((TB,)),                    # one DMA sem per row
            ],
        ),
        compiler_params=pltpu.CompilerParams(
            dimension_semantics=("arbitrary",),                    # reduction over batch tiles
        ),
    )(labels_i32, x, centers)
    return out[0, 0]


def center_loss_ref(x, labels, centers):
    """Pure-JAX reference mirroring the PyTorch forward (distmat expansion)."""
    B = x.shape[0]
    C = centers.shape[0]
    distmat = (
        jnp.sum(x**2, axis=1, keepdims=True)
        + jnp.sum(centers**2, axis=1, keepdims=True).T
        - 2.0 * x @ centers.T
    )
    mask = labels[:, None] == jnp.arange(C)[None, :]
    dist = jnp.clip(distmat, 1e-12, 1e12)
    return jnp.sum(jnp.where(mask, dist, 0.0)) / B


if __name__ == "__main__":
    num_classes = 10
    feat_dim = 32
    batch_size = 8

    key = jax.random.PRNGKey(0)
    kx, kc, kl = jax.random.split(key, 3)

    x = jax.random.normal(kx, (batch_size, feat_dim), dtype=jnp.float32)
    # Deterministic "torch.randn"-style init for the centers parameter.
    centers = jax.random.normal(kc, (num_classes, feat_dim), dtype=jnp.float32)
    labels = jax.random.randint(kl, (batch_size,), 0, num_classes, dtype=jnp.int32)

    loss = jax.block_until_ready(center_loss(x, labels, centers))
    ref = jax.block_until_ready(center_loss_ref(x, labels, centers))

    assert jnp.allclose(loss, ref, rtol=1e-5, atol=1e-4), (loss, ref)
    print("KERNEL_OK")
</pallas_src>

<mosaic_0001>
module attributes {stable_mosaic.version = 11 : i64} {
  func.func @_center_loss_kernel(%arg0: i32, %arg1: memref<8xi32, #tpu.memory_space<smem>>, %arg2: memref<8x32xf32, #tpu.memory_space<vmem>>, %arg3: memref<10x32xf32, #tpu.memory_space<any>>, %arg4: memref<1x1xf32, #tpu.memory_space<vmem>>, %arg5: memref<8x32xf32, #tpu.memory_space<vmem>>, %arg6: memref<8x!tpu.dma_semaphore, #tpu.memory_space<semaphore_mem>>) attributes {dimension_semantics = [#tpu.dimension_semantics<arbitrary>], iteration_bounds = array<i64: 1>, scalar_prefetch = 1 : i64, scratch_operands = 2 : i64, tpu.core_type = #tpu.core_type<tc>, window_params = [{transform_indices = @transform_0, window_bounds = array<i64: 8, 32>}, {}, {pipeline_mode = #tpu.pipeline_mode<synchronous>, transform_indices = @transform_2, window_bounds = array<i64: 1, 1>}]} {
    %c0_i32 = arith.constant 0 : i32
    %0 = arith.cmpi eq, %arg0, %c0_i32 : i32
    %1 = arith.extui %0 : i1 to i32
    %c0_i32_0 = arith.constant 0 : i32
    %2 = arith.cmpi ne, %1, %c0_i32_0 : i32
    scf.if %2 {
      %cst_87 = arith.constant 0.000000e+00 : f32
      %119 = vector.broadcast %cst_87 : f32 to vector<1x1xf32>
      %c0_88 = arith.constant 0 : index
      %c0_89 = arith.constant 0 : index
      %120 = vector.load %arg4[%c0_88, %c0_89] : memref<1x1xf32, #tpu.memory_space<vmem>>, vector<1x1xf32>
      tpu.vector_store %arg4[%c0_88, %c0_89], %119 {strides = array<i32>} : memref<1x1xf32, #tpu.memory_space<vmem>>, vector<1x1xf32>,
    } else {
    }
    %c8_i32 = arith.constant 8 : i32
    %3 = arith.muli %arg0, %c8_i32 : i32
    %c0_i32_1 = arith.constant 0 : i32
    %4 = arith.addi %3, %c0_i32_1 : i32
    %5 = arith.index_cast %4 : i32 to index
    %6 = memref.load %arg1[%5] : memref<8xi32, #tpu.memory_space<smem>>
    %c0_i32_2 = arith.constant 0 : i32
    %c0_i32_3 = arith.constant 0 : i32
    %7 = tpu.memref_slice %arg3[%6, %c0_i32_3] : memref<10x32xf32, #tpu.memory_space<any>> -> memref<1x32xf32, #tpu.memory_space<any>>
    %c0_i32_4 = arith.constant 0 : i32
    %c0_i32_5 = arith.constant 0 : i32
    %8 = tpu.memref_slice %arg5[%c0_i32_4, %c0_i32_5] : memref<8x32xf32, #tpu.memory_space<vmem>> -> memref<1x32xf32, #tpu.memory_space<vmem>>
    %9 = tpu.memref_slice %arg6[%c0_i32_2] : memref<8x!tpu.dma_semaphore, #tpu.memory_space<semaphore_mem>> -> memref<1x!tpu.dma_semaphore, #tpu.memory_space<semaphore_mem>>
    %10 = tpu.memref_squeeze %9 : memref<1x!tpu.dma_semaphore, #tpu.memory_space<semaphore_mem>> -> memref<!tpu.dma_semaphore, #tpu.memory_space<semaphore_mem>>
    tpu.enqueue_dma source(%7 : memref<1x32xf32, #tpu.memory_space<any>>) target(%8 : memref<1x32xf32, #tpu.memory_space<vmem>>) target_semaphore(%10 : memref<!tpu.dma_semaphore, #tpu.memory_space<semaphore_mem>>)
    %c1_i32 = arith.constant 1 : i32
    %11 = arith.addi %3, %c1_i32 : i32
    %12 = arith.index_cast %11 : i32 to index
    %13 = memref.load %arg1[%12] : memref<8xi32, #tpu.memory_space<smem>>
    %c1_i32_6 = arith.constant 1 : i32
    %c0_i32_7 = arith.constant 0 : i32
    %14 = tpu.memref_slice %arg3[%13, %c0_i32_7] : memref<10x32xf32, #tpu.memory_space<any>> -> memref<1x32xf32, #tpu.memory_space<any>>
    %c1_i32_8 = arith.constant 1 : i32
    %c0_i32_9 = arith.constant 0 : i32
    %15 = tpu.memref_slice %arg5[%c1_i32_8, %c0_i32_9] : memref<8x32xf32, #tpu.memory_space<vmem>> -> memref<1x32xf32, #tpu.memory_space<vmem>>
    %16 = tpu.memref_slice %arg6[%c1_i32_6] : memref<8x!tpu.dma_semaphore, #tpu.memory_space<semaphore_mem>> -> memref<1x!tpu.dma_semaphore, #tpu.memory_space<semaphore_mem>>
    %17 = tpu.memref_squeeze %16 : memref<1x!tpu.dma_semaphore, #tpu.memory_space<semaphore_mem>> -> memref<!tpu.dma_semaphore, #tpu.memory_space<semaphore_mem>>
    tpu.enqueue_dma source(%14 : memref<1x32xf32, #tpu.memory_space<any>>) target(%15 : memref<1x32xf32, #tpu.memory_space<vmem>>) target_semaphore(%17 : memref<!tpu.dma_semaphore, #tpu.memory_space<semaphore_mem>>)
    %c2_i32 = arith.constant 2 : i32
    %18 = arith.addi %3, %c2_i32 : i32
    %19 = arith.index_cast %18 : i32 to index
    %20 = memref.load %arg1[%19] : memref<8xi32, #tpu.memory_space<smem>>
    %c2_i32_10 = arith.constant 2 : i32
    %c0_i32_11 = arith.constant 0 : i32
    %21 = tpu.memref_slice %arg3[%20, %c0_i32_11] : memref<10x32xf32, #tpu.memory_space<any>> -> memref<1x32xf32, #tpu.memory_space<any>>
    %c2_i32_12 = arith.constant 2 : i32
    %c0_i32_13 = arith.constant 0 : i32
    %22 = tpu.memref_slice %arg5[%c2_i32_12, %c0_i32_13] : memref<8x32xf32, #tpu.memory_space<vmem>> -> memref<1x32xf32, #tpu.memory_space<vmem>>
    %23 = tpu.memref_slice %arg6[%c2_i32_10] : memref<8x!tpu.dma_semaphore, #tpu.memory_space<semaphore_mem>> -> memref<1x!tpu.dma_semaphore, #tpu.memory_space<semaphore_mem>>
    %24 = tpu.memref_squeeze %23 : memref<1x!tpu.dma_semaphore, #tpu.memory_space<semaphore_mem>> -> memref<!tpu.dma_semaphore, #tpu.memory_space<semaphore_mem>>
    tpu.enqueue_dma source(%21 : memref<1x32xf32, #tpu.memory_space<any>>) target(%22 : memref<1x32xf32, #tpu.memory_space<vmem>>) target_semaphore(%24 : memref<!tpu.dma_semaphore, #tpu.memory_space<semaphore_mem>>)
    %c3_i32 = arith.constant 3 : i32
    %25 = arith.addi %3, %c3_i32 : i32
    %26 = arith.index_cast %25 : i32 to index
    %27 = memref.load %arg1[%26] : memref<8xi32, #tpu.memory_space<smem>>
    %c3_i32_14 = arith.constant 3 : i32
    %c0_i32_15 = arith.constant 0 : i32
    %28 = tpu.memref_slice %arg3[%27, %c0_i32_15] : memref<10x32xf32, #tpu.memory_space<any>> -> memref<1x32xf32, #tpu.memory_space<any>>
    %c3_i32_16 = arith.constant 3 : i32
    %c0_i32_17 = arith.constant 0 : i32
    %29 = tpu.memref_slice %arg5[%c3_i32_16, %c0_i32_17] : memref<8x32xf32, #tpu.memory_space<vmem>> -> memref<1x32xf32, #tpu.memory_space<vmem>>
    %30 = tpu.memref_slice %arg6[%c3_i32_14] : memref<8x!tpu.dma_semaphore, #tpu.memory_space<semaphore_mem>> -> memref<1x!tpu.dma_semaphore, #tpu.memory_space<semaphore_mem>>
    %31 = tpu.memref_squeeze %30 : memref<1x!tpu.dma_semaphore, #tpu.memory_space<semaphore_mem>> -> memref<!tpu.dma_semaphore, #tpu.memory_space<semaphore_mem>>
    tpu.enqueue_dma source(%28 : memref<1x32xf32, #tpu.memory_space<any>>) target(%29 : memref<1x32xf32, #tpu.memory_space<vmem>>) target_semaphore(%31 : memref<!tpu.dma_semaphore, #tpu.memory_space<semaphore_mem>>)
    %c4_i32 = arith.constant 4 : i32
    %32 = arith.addi %3, %c4_i32 : i32
    %33 = arith.index_cast %32 : i32 to index
    %34 = memref.load %arg1[%33] : memref<8xi32, #tpu.memory_space<smem>>
    %c4_i32_18 = arith.constant 4 : i32
    %c0_i32_19 = arith.constant 0 : i32
    %35 = tpu.memref_slice %arg3[%34, %c0_i32_19] : memref<10x32xf32, #tpu.memory_space<any>> -> memref<1x32xf32, #tpu.memory_space<any>>
    %c4_i32_20 = arith.constant 4 : i32
    %c0_i32_21 = arith.constant 0 : i32
    %36 = tpu.memref_slice %arg5[%c4_i32_20, %c0_i32_21] : memref<8x32xf32, #tpu.memory_space<vmem>> -> memref<1x32xf32, #tpu.memory_space<vmem>>
    %37 = tpu.memref_slice %arg6[%c4_i32_18] : memref<8x!tpu.dma_semaphore, #tpu.memory_space<semaphore_mem>> -> memref<1x!tpu.dma_semaphore, #tpu.memory_space<semaphore_mem>>
    %38 = tpu.memref_squeeze %37 : memref<1x!tpu.dma_semaphore, #tpu.memory_space<semaphore_mem>> -> memref<!tpu.dma_semaphore, #tpu.memory_space<semaphore_mem>>
    tpu.enqueue_dma source(%35 : memref<1x32xf32, #tpu.memory_space<any>>) target(%36 : memref<1x32xf32, #tpu.memory_space<vmem>>) target_semaphore(%38 : memref<!tpu.dma_semaphore, #tpu.memory_space<semaphore_mem>>)
    %c5_i32 = arith.constant 5 : i32
    %39 = arith.addi %3, %c5_i32 : i32
    %40 = arith.index_cast %39 : i32 to index
    %41 = memref.load %arg1[%40] : memref<8xi32, #tpu.memory_space<smem>>
    %c5_i32_22 = arith.constant 5 : i32
    %c0_i32_23 = arith.constant 0 : i32
    %42 = tpu.memref_slice %arg3[%41, %c0_i32_23] : memref<10x32xf32, #tpu.memory_space<any>> -> memref<1x32xf32, #tpu.memory_space<any>>
    %c5_i32_24 = arith.constant 5 : i32
    %c0_i32_25 = arith.constant 0 : i32
    %43 = tpu.memref_slice %arg5[%c5_i32_24, %c0_i32_25] : memref<8x32xf32, #tpu.memory_space<vmem>> -> memref<1x32xf32, #tpu.memory_space<vmem>>
    %44 = tpu.memref_slice %arg6[%c5_i32_22] : memref<8x!tpu.dma_semaphore, #tpu.memory_space<semaphore_mem>> -> memref<1x!tpu.dma_semaphore, #tpu.memory_space<semaphore_mem>>
    %45 = tpu.memref_squeeze %44 : memref<1x!tpu.dma_semaphore, #tpu.memory_space<semaphore_mem>> -> memref<!tpu.dma_semaphore, #tpu.memory_space<semaphore_mem>>
    tpu.enqueue_dma source(%42 : memref<1x32xf32, #tpu.memory_space<any>>) target(%43 : memref<1x32xf32, #tpu.memory_space<vmem>>) target_semaphore(%45 : memref<!tpu.dma_semaphore, #tpu.memory_space<semaphore_mem>>)
    %c6_i32 = arith.constant 6 : i32
    %46 = arith.addi %3, %c6_i32 : i32
    %47 = arith.index_cast %46 : i32 to index
    %48 = memref.load %arg1[%47] : memref<8xi32, #tpu.memory_space<smem>>
    %c6_i32_26 = arith.constant 6 : i32
    %c0_i32_27 = arith.constant 0 : i32
    %49 = tpu.memref_slice %arg3[%48, %c0_i32_27] : memref<10x32xf32, #tpu.memory_space<any>> -> memref<1x32xf32, #tpu.memory_space<any>>
    %c6_i32_28 = arith.constant 6 : i32
    %c0_i32_29 = arith.constant 0 : i32
    %50 = tpu.memref_slice %arg5[%c6_i32_28, %c0_i32_29] : memref<8x32xf32, #tpu.memory_space<vmem>> -> memref<1x32xf32, #tpu.memory_space<vmem>>
    %51 = tpu.memref_slice %arg6[%c6_i32_26] : memref<8x!tpu.dma_semaphore, #tpu.memory_space<semaphore_mem>> -> memref<1x!tpu.dma_semaphore, #tpu.memory_space<semaphore_mem>>
    %52 = tpu.memref_squeeze %51 : memref<1x!tpu.dma_semaphore, #tpu.memory_space<semaphore_mem>> -> memref<!tpu.dma_semaphore, #tpu.memory_space<semaphore_mem>>
    tpu.enqueue_dma source(%49 : memref<1x32xf32, #tpu.memory_space<any>>) target(%50 : memref<1x32xf32, #tpu.memory_space<vmem>>) target_semaphore(%52 : memref<!tpu.dma_semaphore, #tpu.memory_space<semaphore_mem>>)
    %c7_i32 = arith.constant 7 : i32
    %53 = arith.addi %3, %c7_i32 : i32
    %54 = arith.index_cast %53 : i32 to index
    %55 = memref.load %arg1[%54] : memref<8xi32, #tpu.memory_space<smem>>
    %c7_i32_30 = arith.constant 7 : i32
    %c0_i32_31 = arith.constant 0 : i32
    %56 = tpu.memref_slice %arg3[%55, %c0_i32_31] : memref<10x32xf32, #tpu.memory_space<any>> -> memref<1x32xf32, #tpu.memory_space<any>>
    %c7_i32_32 = arith.constant 7 : i32
    %c0_i32_33 = arith.constant 0 : i32
    %57 = tpu.memref_slice %arg5[%c7_i32_32, %c0_i32_33] : memref<8x32xf32, #tpu.memory_space<vmem>> -> memref<1x32xf32, #tpu.memory_space<vmem>>
    %58 = tpu.memref_slice %arg6[%c7_i32_30] : memref<8x!tpu.dma_semaphore, #tpu.memory_space<semaphore_mem>> -> memref<1x!tpu.dma_semaphore, #tpu.memory_space<semaphore_mem>>
    %59 = tpu.memref_squeeze %58 : memref<1x!tpu.dma_semaphore, #tpu.memory_space<semaphore_mem>> -> memref<!tpu.dma_semaphore, #tpu.memory_space<semaphore_mem>>
    tpu.enqueue_dma source(%56 : memref<1x32xf32, #tpu.memory_space<any>>) target(%57 : memref<1x32xf32, #tpu.memory_space<vmem>>) target_semaphore(%59 : memref<!tpu.dma_semaphore, #tpu.memory_space<semaphore_mem>>)
    %c0_i32_34 = arith.constant 0 : i32
    %c0_i32_35 = arith.constant 0 : i32
    %c0_i32_36 = arith.constant 0 : i32
    %60 = tpu.memref_slice %arg3[%c0_i32_35, %c0_i32_36] : memref<10x32xf32, #tpu.memory_space<any>> -> memref<1x32xf32, #tpu.memory_space<any>>
    %c0_i32_37 = arith.constant 0 : i32
    %c0_i32_38 = arith.constant 0 : i32
    %61 = tpu.memref_slice %arg5[%c0_i32_37, %c0_i32_38] : memref<8x32xf32, #tpu.memory_space<vmem>> -> memref<1x32xf32, #tpu.memory_space<vmem>>
    %62 = tpu.memref_slice %arg6[%c0_i32_34] : memref<8x!tpu.dma_semaphore, #tpu.memory_space<semaphore_mem>> -> memref<1x!tpu.dma_semaphore, #tpu.memory_space<semaphore_mem>>
    %63 = tpu.memref_squeeze %62 : memref<1x!tpu.dma_semaphore, #tpu.memory_space<semaphore_mem>> -> memref<!tpu.dma_semaphore, #tpu.memory_space<semaphore_mem>>
    tpu.wait_dma2 semaphore(%63 : memref<!tpu.dma_semaphore, #tpu.memory_space<semaphore_mem>>) src(%60 : memref<1x32xf32, #tpu.memory_space<any>>) dst(%61 : memref<1x32xf32, #tpu.memory_space<vmem>>)
    %c1_i32_39 = arith.constant 1 : i32
    %c0_i32_40 = arith.constant 0 : i32
    %c0_i32_41 = arith.constant 0 : i32
    %64 = tpu.memref_slice %arg3[%c0_i32_40, %c0_i32_41] : memref<10x32xf32, #tpu.memory_space<any>> -> memref<1x32xf32, #tpu.memory_space<any>>
    %c1_i32_42 = arith.constant 1 : i32
    %c0_i32_43 = arith.constant 0 : i32
    %65 = tpu.memref_slice %arg5[%c1_i32_42, %c0_i32_43] : memref<8x32xf32, #tpu.memory_space<vmem>> -> memref<1x32xf32, #tpu.memory_space<vmem>>
    %66 = tpu.memref_slice %arg6[%c1_i32_39] : memref<8x!tpu.dma_semaphore, #tpu.memory_space<semaphore_mem>> -> memref<1x!tpu.dma_semaphore, #tpu.memory_space<semaphore_mem>>
    %67 = tpu.memref_squeeze %66 : memref<1x!tpu.dma_semaphore, #tpu.memory_space<semaphore_mem>> -> memref<!tpu.dma_semaphore, #tpu.memory_space<semaphore_mem>>
    tpu.wait_dma2 semaphore(%67 : memref<!tpu.dma_semaphore, #tpu.memory_space<semaphore_mem>>) src(%64 : memref<1x32xf32, #tpu.memory_space<any>>) dst(%65 : memref<1x32xf32, #tpu.memory_space<vmem>>)
    %c2_i32_44 = arith.constant 2 : i32
    %c0_i32_45 = arith.constant 0 : i32
    %c0_i32_46 = arith.constant 0 : i32
    %68 = tpu.memref_slice %arg3[%c0_i32_45, %c0_i32_46] : memref<10x32xf32, #tpu.memory_space<any>> -> memref<1x32xf32, #tpu.memory_space<any>>
    %c2_i32_47 = arith.constant 2 : i32
    %c0_i32_48 = arith.constant 0 : i32
    %69 = tpu.memref_slice %arg5[%c2_i32_47, %c0_i32_48] : memref<8x32xf32, #tpu.memory_space<vmem>> -> memref<1x32xf32, #tpu.memory_space<vmem>>
    %70 = tpu.memref_slice %arg6[%c2_i32_44] : memref<8x!tpu.dma_semaphore, #tpu.memory_space<semaphore_mem>> -> memref<1x!tpu.dma_semaphore, #tpu.memory_space<semaphore_mem>>
    %71 = tpu.memref_squeeze %70 : memref<1x!tpu.dma_semaphore, #tpu.memory_space<semaphore_mem>> -> memref<!tpu.dma_semaphore, #tpu.memory_space<semaphore_mem>>
    tpu.wait_dma2 semaphore(%71 : memref<!tpu.dma_semaphore, #tpu.memory_space<semaphore_mem>>) src(%68 : memref<1x32xf32, #tpu.memory_space<any>>) dst(%69 : memref<1x32xf32, #tpu.memory_space<vmem>>)
    %c3_i32_49 = arith.constant 3 : i32
    %c0_i32_50 = arith.constant 0 : i32
    %c0_i32_51 = arith.constant 0 : i32
    %72 = tpu.memref_slice %arg3[%c0_i32_50, %c0_i32_51] : memref<10x32xf32, #tpu.memory_space<any>> -> memref<1x32xf32, #tpu.memory_space<any>>
    %c3_i32_52 = arith.constant 3 : i32
    %c0_i32_53 = arith.constant 0 : i32
    %73 = tpu.memref_slice %arg5[%c3_i32_52, %c0_i32_53] : memref<8x32xf32, #tpu.memory_space<vmem>> -> memref<1x32xf32, #tpu.memory_space<vmem>>
    %74 = tpu.memref_slice %arg6[%c3_i32_49] : memref<8x!tpu.dma_semaphore, #tpu.memory_space<semaphore_mem>> -> memref<1x!tpu.dma_semaphore, #tpu.memory_space<semaphore_mem>>
    %75 = tpu.memref_squeeze %74 : memref<1x!tpu.dma_semaphore, #tpu.memory_space<semaphore_mem>> -> memref<!tpu.dma_semaphore, #tpu.memory_space<semaphore_mem>>
    tpu.wait_dma2 semaphore(%75 : memref<!tpu.dma_semaphore, #tpu.memory_space<semaphore_mem>>) src(%72 : memref<1x32xf32, #tpu.memory_space<any>>) dst(%73 : memref<1x32xf32, #tpu.memory_space<vmem>>)
    %c4_i32_54 = arith.constant 4 : i32
    %c0_i32_55 = arith.constant 0 : i32
    %c0_i32_56 = arith.constant 0 : i32
    %76 = tpu.memref_slice %arg3[%c0_i32_55, %c0_i32_56] : memref<10x32xf32, #tpu.memory_space<any>> -> memref<1x32xf32, #tpu.memory_space<any>>
    %c4_i32_57 = arith.constant 4 : i32
    %c0_i32_58 = arith.constant 0 : i32
    %77 = tpu.memref_slice %arg5[%c4_i32_57, %c0_i32_58] : memref<8x32xf32, #tpu.memory_space<vmem>> -> memref<1x32xf32, #tpu.memory_space<vmem>>
    %78 = tpu.memref_slice %arg6[%c4_i32_54] : memref<8x!tpu.dma_semaphore, #tpu.memory_space<semaphore_mem>> -> memref<1x!tpu.dma_semaphore, #tpu.memory_space<semaphore_mem>>
    %79 = tpu.memref_squeeze %78 : memref<1x!tpu.dma_semaphore, #tpu.memory_space<semaphore_mem>> -> memref<!tpu.dma_semaphore, #tpu.memory_space<semaphore_mem>>
    tpu.wait_dma2 semaphore(%79 : memref<!tpu.dma_semaphore, #tpu.memory_space<semaphore_mem>>) src(%76 : memref<1x32xf32, #tpu.memory_space<any>>) dst(%77 : memref<1x32xf32, #tpu.memory_space<vmem>>)
    %c5_i32_59 = arith.constant 5 : i32
    %c0_i32_60 = arith.constant 0 : i32
    %c0_i32_61 = arith.constant 0 : i32
    %80 = tpu.memref_slice %arg3[%c0_i32_60, %c0_i32_61] : memref<10x32xf32, #tpu.memory_space<any>> -> memref<1x32xf32, #tpu.memory_space<any>>
    %c5_i32_62 = arith.constant 5 : i32
    %c0_i32_63 = arith.constant 0 : i32
    %81 = tpu.memref_slice %arg5[%c5_i32_62, %c0_i32_63] : memref<8x32xf32, #tpu.memory_space<vmem>> -> memref<1x32xf32, #tpu.memory_space<vmem>>
    %82 = tpu.memref_slice %arg6[%c5_i32_59] : memref<8x!tpu.dma_semaphore, #tpu.memory_space<semaphore_mem>> -> memref<1x!tpu.dma_semaphore, #tpu.memory_space<semaphore_mem>>
    %83 = tpu.memref_squeeze %82 : memref<1x!tpu.dma_semaphore, #tpu.memory_space<semaphore_mem>> -> memref<!tpu.dma_semaphore, #tpu.memory_space<semaphore_mem>>
    tpu.wait_dma2 semaphore(%83 : memref<!tpu.dma_semaphore, #tpu.memory_space<semaphore_mem>>) src(%80 : memref<1x32xf32, #tpu.memory_space<any>>) dst(%81 : memref<1x32xf32, #tpu.memory_space<vmem>>)
    %c6_i32_64 = arith.constant 6 : i32
    %c0_i32_65 = arith.constant 0 : i32
    %c0_i32_66 = arith.constant 0 : i32
    %84 = tpu.memref_slice %arg3[%c0_i32_65, %c0_i32_66] : memref<10x32xf32, #tpu.memory_space<any>> -> memref<1x32xf32, #tpu.memory_space<any>>
    %c6_i32_67 = arith.constant 6 : i32
    %c0_i32_68 = arith.constant 0 : i32
    %85 = tpu.memref_slice %arg5[%c6_i32_67, %c0_i32_68] : memref<8x32xf32, #tpu.memory_space<vmem>> -> memref<1x32xf32, #tpu.memory_space<vmem>>
    %86 = tpu.memref_slice %arg6[%c6_i32_64] : memref<8x!tpu.dma_semaphore, #tpu.memory_space<semaphore_mem>> -> memref<1x!tpu.dma_semaphore, #tpu.memory_space<semaphore_mem>>
    %87 = tpu.memref_squeeze %86 : memref<1x!tpu.dma_semaphore, #tpu.memory_space<semaphore_mem>> -> memref<!tpu.dma_semaphore, #tpu.memory_space<semaphore_mem>>
    tpu.wait_dma2 semaphore(%87 : memref<!tpu.dma_semaphore, #tpu.memory_space<semaphore_mem>>) src(%84 : memref<1x32xf32, #tpu.memory_space<any>>) dst(%85 : memref<1x32xf32, #tpu.memory_space<vmem>>)
    %c7_i32_69 = arith.constant 7 : i32
    %c0_i32_70 = arith.constant 0 : i32
    %c0_i32_71 = arith.constant 0 : i32
    %88 = tpu.memref_slice %arg3[%c0_i32_70, %c0_i32_71] : memref<10x32xf32, #tpu.memory_space<any>> -> memref<1x32xf32, #tpu.memory_space<any>>
    %c7_i32_72 = arith.constant 7 : i32
    %c0_i32_73 = arith.constant 0 : i32
    %89 = tpu.memref_slice %arg5[%c7_i32_72, %c0_i32_73] : memref<8x32xf32, #tpu.memory_space<vmem>> -> memref<1x32xf32, #tpu.memory_space<vmem>>
    %90 = tpu.memref_slice %arg6[%c7_i32_69] : memref<8x!tpu.dma_semaphore, #tpu.memory_space<semaphore_mem>> -> memref<1x!tpu.dma_semaphore, #tpu.memory_space<semaphore_mem>>
    %91 = tpu.memref_squeeze %90 : memref<1x!tpu.dma_semaphore, #tpu.memory_space<semaphore_mem>> -> memref<!tpu.dma_semaphore, #tpu.memory_space<semaphore_mem>>
    tpu.wait_dma2 semaphore(%91 : memref<!tpu.dma_semaphore, #tpu.memory_space<semaphore_mem>>) src(%88 : memref<1x32xf32, #tpu.memory_space<any>>) dst(%89 : memref<1x32xf32, #tpu.memory_space<vmem>>)
    %c0 = arith.constant 0 : index
    %c0_74 = arith.constant 0 : index
    %92 = vector.load %arg2[%c0, %c0_74] : memref<8x32xf32, #tpu.memory_space<vmem>>, vector<8x32xf32>
    %c0_75 = arith.constant 0 : index
    %c0_76 = arith.constant 0 : index
    %93 = vector.load %arg5[%c0_75, %c0_76] : memref<8x32xf32, #tpu.memory_space<vmem>>, vector<8x32xf32>
    %94 = arith.subf %92, %93 : vector<8x32xf32>
    %95 = arith.mulf %94, %94 : vector<8x32xf32>
    %cst = arith.constant dense<0.000000e+00> : vector<8xf32>
    %96 = vector.multi_reduction <add>, %95, %cst [1] : vector<8x32xf32> to vector<8xf32>
    %97 = vector.shape_cast %96 : vector<8xf32> to vector<8x1xf32>
    %cst_77 = arith.constant 9.99999996E-13 : f32
    %cst_78 = arith.constant 9.99999995E+11 : f32
    %98 = vector.broadcast %cst_77 : f32 to vector<8x1xf32>
    %99 = arith.maximumf %98, %97 : vector<8x1xf32>
    %100 = vector.broadcast %cst_78 : f32 to vector<8x1xf32>
    %101 = arith.minimumf %100, %99 : vector<8x1xf32>
    %102 = tpu.iota {dimensions = array<i32: 0>} : vector<8x1xi32>
    %103 = vector.broadcast %3 : i32 to vector<8x1xi32>
    %104 = arith.addi %103, %102 : vector<8x1xi32>
    %c8_i32_79 = arith.constant 8 : i32
    %105 = vector.broadcast %c8_i32_79 : i32 to vector<8x1xi32>
    %106 = arith.cmpi slt, %104, %105 : vector<8x1xi32>
    %cst_80 = arith.constant 0.000000e+00 : f32
    %107 = vector.broadcast %cst_80 : f32 to vector<8x1xf32>
    %108 = arith.select %106, %101, %107 : vector<8x1xi1>, vector<8x1xf32>
    %109 = vector.shape_cast %108 : vector<8x1xf32> to vector<1x8x1xf32>
    %cst_81 = arith.constant dense<0.000000e+00> : vector<1xf32>
    %110 = vector.multi_reduction <add>, %109, %cst_81 [1, 2] : vector<1x8x1xf32> to vector<1xf32>
    %111 = vector.shape_cast %110 : vector<1xf32> to vector<1x1x1xf32>
    %112 = vector.extract %111[0, 0, 0] : f32 from vector<1x1x1xf32>
    %113 = vector.broadcast %112 : f32 to vector<1x1xf32>
    %c0_82 = arith.constant 0 : index
    %c0_83 = arith.constant 0 : index
    %114 = vector.load %arg4[%c0_82, %c0_83] : memref<1x1xf32, #tpu.memory_space<vmem>>, vector<1x1xf32>
    %cst_84 = arith.constant 1.250000e-01 : f32
    %115 = vector.broadcast %cst_84 : f32 to vector<1x1xf32>
    %116 = arith.mulf %113, %115 : vector<1x1xf32>
    %117 = arith.addf %114, %116 : vector<1x1xf32>
    %c0_85 = arith.constant 0 : index
    %c0_86 = arith.constant 0 : index
    %118 = vector.load %arg4[%c0_85, %c0_86] : memref<1x1xf32, #tpu.memory_space<vmem>>, vector<1x1xf32>
    tpu.vector_store %arg4[%c0_85, %c0_86], %117 {strides = array<i32>} : memref<1x1xf32, #tpu.memory_space<vmem>>, vector<1x1xf32>,
    return
  }
  func.func @transform_0(%arg0: i32, %arg1: memref<8xi32, #tpu.memory_space<smem>>) -> (i32, i32) {
    %c0_i32 = arith.constant 0 : i32
    %c0_i32_0 = arith.constant 0 : i32
    return %arg0, %c0_i32 : i32, i32
  }
  func.func @transform_2(%arg0: i32, %arg1: memref<8xi32, #tpu.memory_space<smem>>) -> (i32, i32) {
    %c0_i32 = arith.constant 0 : i32
    %c0_i32_0 = arith.constant 0 : i32
    %c0_i32_1 = arith.constant 0 : i32
    return %c0_i32, %c0_i32_0 : i32, i32
  }
}

</mosaic_0001>

<bundles_post_ra>
// kernel: tpu_custom_call.1
= control target key start
LH: loop header
LB: loop body
LE: loop exit
PB: predicated region body
PF: predicated region fallthrough
CT: control target
= control target key end

     0   :  { %s586_s12 = smov [#allocation5]   ;;  %s760_s0 = inlined_call_operand.hbm [shape: s32[8], index: 0, kind: input, shape index: {}]   ;;  %s761_s1 = inlined_call_operand.hbm [shape: f32[8,32], index: 1, kind: input, shape index: {}]   ;;  %s762_s2 = inlined_call_operand.hbm [shape: f32[10,32], index: 2, kind: input, shape index: {}]   ;;  %s763_s3 = inlined_call_operand.hbm [shape: f32[1,1], index: 3, kind: output, shape index: {}]  }
   0x1   :  { %9 = dma.hbm_to_smem %s760_s0, 16, %s586_s12, [#allocation4] }
   0x2   :  { %564 = dma.done.wait [#allocation4], 16 }
   0x3   :  { %565 = vsyncadd [#allocation4], 4294967280 }
   0x4   :  { %11 = sfence }
   0x5   :  { %12 = vsyncpa [#allocation7], 0 }
   0x6   :  { %13 = vsyncpa [#allocation8], 0  ;;  %s587_s15 = smov [#allocation6]  }
   0x7   :  { %s20_s16 = sshll.u32 %s587_s15, 4  ;;  %s21_s16 = int_to_ptr.vmem [resolvable:$true] %s20_s16 }
   0x8   :  { %s356_s17 = scalar_lea.vmem %s21_s16, 128  ;;  %p361_p1 = scmp.lt.s32.totalorder %s21_s16, %s21_s16 }
   0x9   :  { %p357_p0 = scmp.ne.s32.totalorder %s21_s16, %s356_s17  ;;  %p362_p2 = scmp.lt.s32.totalorder %s356_s17, %s356_s17 }
   0xb   :  { %p363_p3 = por %p362_p2, %p361_p1 }
   0xd   :  { %p364_p4 = pnand %p363_p3, %p357_p0 }
   0xf   :  { %367 = shalt.err (!%p364_p4)
}
  0x10   :  { %23 = dma.hbm_to_vmem [thread:$0]  %s761_s1, 128, %s21_s16, [#allocation7]  }
  0x11   :  { %566 = dma.done.wait [#allocation7], 128  }
  0x12   :  { %567 = vsyncadd [#allocation7], 4294967168  ;;  %vm31_vm0 = vcmask 0   ;;  %s34_s0 = sld [smem:[#allocation5]]  ;;  %s588_s20 = smov [#allocation2]   ;;  %v589_v0 = vmov 0.0  }
  0x13   :  { %s44_s21 = sshll.u32 %s588_s20, 4  ;;  %32 = vst.msk [vmem:[#allocation9] sm:$0x1] %vm31_vm0, %v589_v0  ;;  %s627_s22 = sld [smem:[#allocation5 + $0x1]]  ;;  %s625_s21 = int_to_ptr.vmem [resolvable:$true] %s44_s21 }
  0x14   :  { %s590_s23 = smov [#allocation2 + $0x1]   ;;  %s629_s25 = sld [smem:[#allocation5 + $0x2]] }
  0x15   :  { %s61_s24 = sshll.u32 %s590_s23, 4  ;;  %s591_s1 = smov [#allocation2 + $0x2]   ;;  %s631_s24 = int_to_ptr.vmem [resolvable:$true] %s61_s24 }
  0x16   :  { %s78_s26 = sshll.u32 %s591_s1, 4  ;;  %s633_s27 = sld [smem:[#allocation5 + $0x3]]  ;;  %s635_s26 = int_to_ptr.vmem [resolvable:$true] %s78_s26 }
  0x17   :  { %s592_s29 = smov [#allocation2 + $0x3]   ;;  %s646_s11 = scalar_lea.hbm %s762_s2, 256 }
  0x18   :  { %s303_s28 = sshll.u32 %s34_s0, 4  ;;  %s637_s30 = sshll.u32 %s592_s29, 4  ;;  %s96_s30 = int_to_ptr.vmem [resolvable:$true] %s637_s30 }
  0x19   :  { %s36_s6 = scalar_lea.hbm %s762_s2, %s303_s28  ;;  %s305_s7 = sshll.u32 %s627_s22, 4 }
  0x1a   :  { %s368_s8 = scalar_lea.hbm %s36_s6, 16  ;;  %p371_p6 = scmp.lt.s32.totalorder %s36_s6, %s762_s2 }
  0x1b   :  { %p369_p5 = scmp.ne.s32.totalorder %s36_s6, %s368_s8  ;;  %p372_p7 = scmp.lt.s32.totalorder %s646_s11, %s368_s8 }
  0x1d   :  { %p373_p8 = por %p372_p7, %p371_p6 }
  0x1f   :  { %p374_p9 = pnand %p373_p8, %p369_p5 }
  0x21   :  { %377 = shalt.err (!%p374_p9)  }
  0x22   :  { %s378_s14 = scalar_lea.vmem %s625_s21, 16  ;;  %s655_s15 = scalar_lea.vmem %s625_s21, 128 }
  0x23   :  { %p379_p10 = scmp.ne.s32.totalorder %s625_s21, %s378_s14  ;;  %p383_p11 = scmp.lt.s32.totalorder %s625_s21, %s625_s21 }
  0x24   :  { %p384_p12 = scmp.lt.s32.totalorder %s655_s15, %s378_s14 }
  0x26   :  { %p385_p13 = por %p384_p12, %p383_p11 }
  0x28   :  { %p386_p0 = pnand %p385_p13, %p379_p10 }
  0x2a   :  { %389 = shalt.err (!%p386_p0)  }
  0x2b   :  { %47 = dma.hbm_to_vmem [thread:$0]  %s36_s6, 16, %s625_s21, [#allocation3] }
  0x2c   :  { %s51_s18 = scalar_lea.hbm %s762_s2, %s305_s7  ;;  %s307_s19 = sshll.u32 %s629_s25, 4 }
  0x2d   :  { %s390_s0 = scalar_lea.hbm %s51_s18, 16  ;;  %p393_p2 = scmp.lt.s32.totalorder %s51_s18, %s762_s2 }
  0x2e   :  { %p391_p1 = scmp.ne.s32.totalorder %s51_s18, %s390_s0  ;;  %p394_p3 = scmp.lt.s32.totalorder %s646_s11, %s390_s0 }
  0x30   :  { %p395_p4 = por %p394_p3, %p393_p2 }
  0x32   :  { %p396_p5 = pnand %p395_p4, %p391_p1 }
  0x34   :  { %399 = shalt.err (!%p396_p5)  }
  0x35   :  { %s400_s23 = scalar_lea.vmem %s631_s24, 16  ;;  %p405_p7 = scmp.lt.s32.totalorder %s631_s24, %s625_s21 }
  0x36   :  { %p401_p6 = scmp.ne.s32.totalorder %s631_s24, %s400_s23  ;;  %p406_p8 = scmp.lt.s32.totalorder %s655_s15, %s400_s23 }
  0x38   :  { %p407_p9 = por %p406_p8, %p405_p7 }
  0x3a   :  { %p408_p10 = pnand %p407_p9, %p401_p6 }
  0x3c   :  { %411 = shalt.err (!%p408_p10)  }
  0x3d   :  { %64 = dma.hbm_to_vmem [thread:$0]  %s51_s18, 16, %s631_s24, [#allocation3 + $0x1] }
  0x3e   :  { %s68_s28 = scalar_lea.hbm %s762_s2, %s307_s19  ;;  %s309_s29 = sshll.u32 %s633_s27, 4 }
  0x3f   :  { %s412_s4 = scalar_lea.hbm %s68_s28, 16  ;;  %p415_p12 = scmp.lt.s32.totalorder %s68_s28, %s762_s2 }
  0x40   :  { %p413_p11 = scmp.ne.s32.totalorder %s68_s28, %s412_s4  ;;  %p416_p13 = scmp.lt.s32.totalorder %s646_s11, %s412_s4 }
  0x42   :  { %p417_p0 = por %p416_p13, %p415_p12 }
  0x44   :  { %p418_p1 = pnand %p417_p0, %p413_p11 }
  0x46   :  { %421 = shalt.err (!%p418_p1)  }
  0x47   :  { %s422_s24 = scalar_lea.vmem %s635_s26, 16  ;;  %p427_p3 = scmp.lt.s32.totalorder %s635_s26, %s625_s21 }
  0x48   :  { %p423_p2 = scmp.ne.s32.totalorder %s635_s26, %s422_s24  ;;  %p428_p4 = scmp.lt.s32.totalorder %s655_s15, %s422_s24 }
  0x4a   :  { %p429_p5 = por %p428_p4, %p427_p3 }
  0x4c   :  { %p430_p6 = pnand %p429_p5, %p423_p2 }
  0x4e   :  { %433 = shalt.err (!%p430_p6)  }
  0x4f   :  { %81 = dma.hbm_to_vmem [thread:$0]  %s68_s28, 16, %s635_s26, [#allocation3 + $0x2] }
  0x50   :  { %s85_s8 = scalar_lea.hbm %s762_s2, %s309_s29 }
  0x51   :  { %s434_s9 = scalar_lea.hbm %s85_s8, 16  ;;  %p437_p8 = scmp.lt.s32.totalorder %s85_s8, %s762_s2 }
  0x52   :  { %p435_p7 = scmp.ne.s32.totalorder %s85_s8, %s434_s9  ;;  %p438_p9 = scmp.lt.s32.totalorder %s646_s11, %s434_s9 }
  0x54   :  { %p439_p10 = por %p438_p9, %p437_p8 }
  0x56   :  { %p440_p11 = pnand %p439_p10, %p435_p7 }
  0x58   :  { %443 = shalt.err (!%p440_p11)  }
  0x59   :  { %s444_s13 = scalar_lea.vmem %s96_s30, 16  ;;  %p449_p13 = scmp.lt.s32.totalorder %s96_s30, %s625_s21 }
  0x5a   :  { %p445_p12 = scmp.ne.s32.totalorder %s96_s30, %s444_s13  ;;  %p450_p0 = scmp.lt.s32.totalorder %s655_s15, %s444_s13 }
  0x5c   :  { %p451_p1 = por %p450_p0, %p449_p13 }
  0x5e   :  { %p452_p2 = pnand %p451_p1, %p445_p12 }
  0x60   :  { %455 = shalt.err (!%p452_p2)  }
  0x61   :  { %98 = dma.hbm_to_vmem [thread:$0]  %s85_s8, 16, %s96_s30, [#allocation3 + $0x3] }
  0x62   :  { %s310_s26 = sld [smem:[#allocation5 + $0x4]]  ;;  %s593_s14 = smov [#allocation2 + $0x4]  }
  0x63   :  { %s112_s16 = sshll.u32 %s593_s14, 4  ;;  %s699_s17 = sld [smem:[#allocation5 + $0x5]]  ;;  %s113_s16 = int_to_ptr.vmem [resolvable:$true] %s112_s16 }
  0x64   :  { %s594_s18 = smov [#allocation2 + $0x5]   ;;  %s701_s0 = sld [smem:[#allocation5 + $0x6]] }
  0x65   :  { %s129_s19 = sshll.u32 %s594_s18, 4  ;;  %s595_s20 = smov [#allocation2 + $0x6]   ;;  %s703_s19 = int_to_ptr.vmem [resolvable:$true] %s129_s19 }
  0x66   :  { %s146_s22 = sshll.u32 %s595_s20, 4  ;;  %s705_s23 = sld [smem:[#allocation5 + $0x7]]  ;;  %s707_s22 = int_to_ptr.vmem [resolvable:$true] %s146_s22 }
  0x68   :  { %s311_s25 = sshll.u32 %s310_s26, 4 }
  0x69   :  { %s102_s28 = scalar_lea.hbm %s762_s2, %s311_s25  ;;  %s313_s29 = sshll.u32 %s699_s17, 4 }
  0x6a   :  { %s456_s4 = scalar_lea.hbm %s102_s28, 16  ;;  %p459_p4 = scmp.lt.s32.totalorder %s102_s28, %s762_s2 }
  0x6b   :  { %p457_p3 = scmp.ne.s32.totalorder %s102_s28, %s456_s4  ;;  %p460_p5 = scmp.lt.s32.totalorder %s646_s11, %s456_s4 }
  0x6d   :  { %p461_p6 = por %p460_p5, %p459_p4 }
  0x6f   :  { %p462_p7 = pnand %p461_p6, %p457_p3 }
  0x71   :  { %465 = shalt.err (!%p462_p7)  }
  0x72   :  { %s466_s24 = scalar_lea.vmem %s113_s16, 16  ;;  %p471_p9 = scmp.lt.s32.totalorder %s113_s16, %s625_s21 }
  0x73   :  { %p467_p8 = scmp.ne.s32.totalorder %s113_s16, %s466_s24  ;;  %p472_p10 = scmp.lt.s32.totalorder %s655_s15, %s466_s24 }
  0x75   :  { %p473_p11 = por %p472_p10, %p471_p9 }
  0x77   :  { %p474_p12 = pnand %p473_p11, %p467_p8 }
  0x79   :  { %477 = shalt.err (!%p474_p12)  }
  0x7a   :  { %115 = dma.hbm_to_vmem [thread:$0]  %s102_s28, 16, %s113_s16, [#allocation3 + $0x4] }
  0x7b   :  { %s119_s8 = scalar_lea.hbm %s762_s2, %s313_s29  ;;  %s315_s9 = sshll.u32 %s701_s0, 4 }
  0x7c   :  { %s478_s10 = scalar_lea.hbm %s119_s8, 16  ;;  %p481_p0 = scmp.lt.s32.totalorder %s119_s8, %s762_s2 }
  0x7d   :  { %p479_p13 = scmp.ne.s32.totalorder %s119_s8, %s478_s10  ;;  %p482_p1 = scmp.lt.s32.totalorder %s646_s11, %s478_s10 }
  0x7f   :  { %p483_p2 = por %p482_p1, %p481_p0 }
  0x81   :  { %p484_p3 = pnand %p483_p2, %p479_p13 }
  0x83   :  { %487 = shalt.err (!%p484_p3)  }
  0x84   :  { %s488_s26 = scalar_lea.vmem %s703_s19, 16  ;;  %p493_p5 = scmp.lt.s32.totalorder %s703_s19, %s625_s21 }
  0x85   :  { %p489_p4 = scmp.ne.s32.totalorder %s703_s19, %s488_s26  ;;  %p494_p6 = scmp.lt.s32.totalorder %s655_s15, %s488_s26 }
  0x87   :  { %p495_p7 = por %p494_p6, %p493_p5 }
  0x89   :  { %p496_p8 = pnand %p495_p7, %p489_p4 }
  0x8b   :  { %499 = shalt.err (!%p496_p8)  }
  0x8c   :  { %132 = dma.hbm_to_vmem [thread:$0]  %s119_s8, 16, %s703_s19, [#allocation3 + $0x5] }
  0x8d   :  { %s136_s17 = scalar_lea.hbm %s762_s2, %s315_s9  ;;  %s317_s18 = sshll.u32 %s705_s23, 4 }
  0x8e   :  { %s500_s0 = scalar_lea.hbm %s136_s17, 16  ;;  %p503_p10 = scmp.lt.s32.totalorder %s136_s17, %s762_s2 }
  0x8f   :  { %p501_p9 = scmp.ne.s32.totalorder %s136_s17, %s500_s0  ;;  %p504_p11 = scmp.lt.s32.totalorder %s646_s11, %s500_s0 }
  0x91   :  { %p505_p12 = por %p504_p11, %p503_p10 }
  0x93   :  { %p506_p13 = pnand %p505_p12, %p501_p9 }
  0x95   :  { %509 = shalt.err (!%p506_p13)  }
  0x96   :  { %s510_s19 = scalar_lea.vmem %s707_s22, 16  ;;  %p515_p1 = scmp.lt.s32.totalorder %s707_s22, %s625_s21 }
  0x97   :  { %p511_p0 = scmp.ne.s32.totalorder %s707_s22, %s510_s19  ;;  %p516_p2 = scmp.lt.s32.totalorder %s655_s15, %s510_s19 }
  0x99   :  { %p517_p3 = por %p516_p2, %p515_p1 }
  0x9b   :  { %p518_p4 = pnand %p517_p3, %p511_p0 }
  0x9d   :  { %521 = shalt.err (!%p518_p4)  }
  0x9e   :  { %149 = dma.hbm_to_vmem [thread:$0]  %s136_s17, 16, %s707_s22, [#allocation3 + $0x6] }
  0x9f   :  { %s153_s1 = scalar_lea.hbm %s762_s2, %s317_s18  ;;  %s596_s28 = smov [#allocation2 + $0x7]  }
  0xa0   :  { %s163_s29 = sshll.u32 %s596_s28, 4  ;;  %s522_s4 = scalar_lea.hbm %s153_s1, 16  ;;  %s164_s29 = int_to_ptr.vmem [resolvable:$true] %s163_s29 }
  0xa1   :  { %p523_p5 = scmp.ne.s32.totalorder %s153_s1, %s522_s4  ;;  %p525_p6 = scmp.lt.s32.totalorder %s153_s1, %s762_s2 }
  0xa2   :  { %p526_p7 = scmp.lt.s32.totalorder %s646_s11, %s522_s4 }
  0xa4   :  { %p527_p8 = por %p526_p7, %p525_p6 }
  0xa6   :  { %p528_p9 = pnand %p527_p8, %p523_p5 }
  0xa8   :  { %531 = shalt.err (!%p528_p9)  }
  0xa9   :  { %s532_s24 = scalar_lea.vmem %s164_s29, 16  ;;  %p537_p11 = scmp.lt.s32.totalorder %s164_s29, %s625_s21 }
  0xaa   :  { %p533_p10 = scmp.ne.s32.totalorder %s164_s29, %s532_s24  ;;  %p538_p12 = scmp.lt.s32.totalorder %s655_s15, %s532_s24 }
  0xac   :  { %p539_p13 = por %p538_p12, %p537_p11 }
  0xae   :  { %p540_p0 = pnand %p539_p13, %p533_p10 }
  0xb0   :  { %543 = shalt.err (!%p540_p0)  }
  0xb1   :  { %166 = dma.hbm_to_vmem [thread:$0]  %s153_s1, 16, %s164_s29, [#allocation3 + $0x7] }
  0xb2   :  { %568 = dma.done.wait [#allocation3], 16 }
  0xb3   :  { %569 = vsyncadd [#allocation3], 4294967280 }
  0xb4   :  { %570 = dma.done.wait [#allocation3 + $0x1], 16 }
  0xb5   :  { %571 = vsyncadd [#allocation3 + $0x1], 4294967280 }
  0xb6   :  { %572 = dma.done.wait [#allocation3 + $0x2], 16 }
  0xb7   :  { %573 = vsyncadd [#allocation3 + $0x2], 4294967280 }
  0xb8   :  { %574 = dma.done.wait [#allocation3 + $0x3], 16 }
  0xb9   :  { %575 = vsyncadd [#allocation3 + $0x3], 4294967280 }
  0xba   :  { %576 = dma.done.wait [#allocation3 + $0x4], 16 }
  0xbb   :  { %577 = vsyncadd [#allocation3 + $0x4], 4294967280 }
  0xbc   :  { %578 = dma.done.wait [#allocation3 + $0x5], 16 }
  0xbd   :  { %579 = vsyncadd [#allocation3 + $0x5], 4294967280 }
  0xbe   :  { %580 = dma.done.wait [#allocation3 + $0x6], 16 }
  0xbf   :  { %581 = vsyncadd [#allocation3 + $0x6], 4294967280 }
  0xc0   :  { %582 = dma.done.wait [#allocation3 + $0x7], 16 }
  0xc1   :  { %583 = vsyncadd [#allocation3 + $0x7], 4294967280  ;;  %v184_v1 = vld [vmem:[#allocation6] sm:$0xff]  ;;  %v185_v2 = vld [vmem:[#allocation2] sm:$0xff]  ;;  %vm188_vm1 = vcmask 261120   ;;  %vm200_vm2 = vcmask 7168  }
  0xc2   :  { %v186_v3 = vsub.f32 %v184_v1, %v185_v2  ;;  %v212_v18 = vld [vmem:[#allocation9] sm:$0x1]  ;;  %s597_s21 = smov [#allocation9]  }
  0xc3   :  { %s223_s11 = sshll.u32 %s597_s21, 4  ;;  %s224_s11 = int_to_ptr.vmem [resolvable:$true] %s223_s11 }
  0xc4   :  { %v187_v4 = vmul.f32 %v186_v3, %v186_v3  ;;  %s544_s15 = scalar_lea.vmem %s224_s11, 16  ;;  %s548_s22 = scalar_lea.vmem %s224_s11, 32 }
  0xc5   :  { %p545_p1 = scmp.ne.s32.totalorder %s224_s11, %s544_s15  ;;  %p549_p2 = scmp.lt.s32.totalorder %s224_s11, %s224_s11 }
  0xc6   :  { %v189_v5 = vsel %vm188_vm1, %v187_v4, 0.0  ;;  %p550_p3 = scmp.lt.s32.totalorder %s548_s22, %s544_s15 }
  0xc7   :  { %190 = vadd.xlane.f32.xlu0 %v189_v5 }
  0xc8   :  { %p551_p4 = por %p550_p3, %p549_p2 }
  0xca   :  { %p552_p5 = pnand %p551_p4, %p545_p1 }
 0x150   :  { %v191_v6 = vpop.xlane.xlu0 %190 }
 0x151   :  { %v192_v7 = vmax.f32 %v191_v6, 1e-12 }
 0x153   :  { %v193_v8 = vmin.f32 %v192_v7, 1e+12 }
 0x155   :  { %v201_v9 = vsel %vm200_vm2, %v193_v8, 0.0 }
 0x156   :  { %202 = vadd.xlane.f32.xlu0 %v201_v9 }
 0x1df   :  { %v203_v10 = vpop.xlane.xlu0 %202 }
 0x1e0   :  { %v204_v11 = vrot.slane %v203_v10, 4 }
 0x1e2   :  { %v205_v12 = vadd.f32 %v204_v11, %v203_v10 }
 0x1e4   :  { %v206_v13 = vrot.slane %v205_v12, 2 }
 0x1e6   :  { %v207_v14 = vadd.f32 %v206_v13, %v205_v12 }
 0x1e8   :  { %v208_v15 = vrot.slane %v207_v14, 1 }
 0x1ea   :  { %v209_v16 = vadd.f32 %v208_v15, %v207_v14 }
 0x1ec   :  { %326 = vpush %v209_v16 }
 0x21d   :  { %s327_s2 = spop %326 }
 0x21e   :  { %v211_v17 = vstv %s327_s2 }
 0x21f   :  { %v213_v19 = vmul.f32 0.125, %v211_v17 }
 0x221   :  { %v214_v20 = vadd.f32 %v213_v19, %v212_v18 }
 0x223   :  { %216 = vst.msk [vmem:[#allocation9] sm:$0x1] %vm31_vm0, %v214_v20 }
 0x224   :  { %555 = shalt.err (!%p552_p5)
}
 0x225   :  { %226 = dma.vmem_to_hbm [thread:$0]  %s224_s11, 16, %s763_s3, [#allocation8]  }
 0x226   :  { %584 = dma.done.wait [#allocation8], 16  }
 0x227   :  { %585 = vsyncadd [#allocation8], 4294967280 }
 0x228   :  { %230 = vsyncpa [#allocation7], 1 }
 0x229   :  { %231 = vsyncpa [#allocation8], 1 }
 0x22a   :  { %232 = vsyncmov [#allocation3] }
 0x22d   :  { %s233_s8 = vpop.sfrf %232 }
 0x22e   :  { %p318_p6 = scmp.ne.s32.totalorder %s233_s8, 0 }
 0x230   :  { %237 = shalt.err (%p318_p6)  }
 0x231   :  { %239 = vsyncmov [#allocation3 + $0x1] }
 0x234   :  { %s240_s9 = vpop.sfrf %239 }
 0x235   :  { %p319_p7 = scmp.ne.s32.totalorder %s240_s9, 0 }
 0x237   :  { %244 = shalt.err (%p319_p7)  }
 0x238   :  { %246 = vsyncmov [#allocation3 + $0x2] }
 0x23b   :  { %s247_s10 = vpop.sfrf %246 }
 0x23c   :  { %p320_p8 = scmp.ne.s32.totalorder %s247_s10, 0 }
 0x23e   :  { %251 = shalt.err (%p320_p8)  }
 0x23f   :  { %253 = vsyncmov [#allocation3 + $0x3] }
 0x242   :  { %s254_s12 = vpop.sfrf %253 }
 0x243   :  { %p321_p9 = scmp.ne.s32.totalorder %s254_s12, 0 }
 0x245   :  { %258 = shalt.err (%p321_p9)  }
 0x246   :  { %260 = vsyncmov [#allocation3 + $0x4] }
 0x249   :  { %s261_s3 = vpop.sfrf %260 }
 0x24a   :  { %p322_p10 = scmp.ne.s32.totalorder %s261_s3, 0 }
 0x24c   :  { %265 = shalt.err (%p322_p10)  }
 0x24d   :  { %267 = vsyncmov [#allocation3 + $0x5] }
 0x250   :  { %s268_s13 = vpop.sfrf %267 }
 0x251   :  { %p323_p11 = scmp.ne.s32.totalorder %s268_s13, 0 }
 0x253   :  { %272 = shalt.err (%p323_p11)  }
 0x254   :  { %274 = vsyncmov [#allocation3 + $0x6] }
 0x257   :  { %s275_s26 = vpop.sfrf %274 }
 0x258   :  { %p324_p12 = scmp.ne.s32.totalorder %s275_s26, 0 }
 0x25a   :  { %279 = shalt.err (%p324_p12)  }
 0x25b   :  { %281 = vsyncmov [#allocation3 + $0x7] }
 0x25e   :  { %s282_s14 = vpop.sfrf %281 }
 0x25f   :  { %p325_p13 = scmp.ne.s32.totalorder %s282_s14, 0 }
 0x261   :  { %286 = shalt.err (%p325_p13)  }

</bundles_post_ra>
